<compile_context>
chip_gen: v6e
topology: v6e:2x2x1
jax: 0.10.0
libtpu: 0.0.40
codegen_flags: <defaults>
</compile_context>

<pallas_src>
from functools import partial

import jax
import jax.numpy as jnp
from jax import lax
from jax.experimental import pallas as pl
from jax.experimental.pallas import tpu as pltpu


def _round_up(x, m):
    return ((x + m - 1) // m) * m


def focal_loss_kernel(logits_ref, targets_ref, out_ref, *,
                      alpha, gamma, n_total, tile_n, needs_mask, reduction):
    pid = pl.program_id(0)

    @pl.when(pid == 0)
    def _init():
        out_ref[...] = jnp.zeros_like(out_ref)

    logits = logits_ref[...].astype(jnp.float32)       # (C, TILE_N) classes x batch
    tgt = targets_ref[...]                             # (1, TILE_N) int32
    c, tn = logits.shape

    # --- log-softmax pieces; class reductions are sublane (axis-0) reductions ---
    col_max = jnp.max(logits, axis=0, keepdims=True)              # (1, TILE_N)
    shifted = logits - col_max                                    # (C, TILE_N)
    exp_shifted = jnp.exp(shifted)                                # (C, TILE_N) EUP
    sum_exp = jnp.sum(exp_shifted, axis=0, keepdims=True)         # (1, TILE_N)

    # Gather target-class shifted logit via a sublane one-hot (no dynamic gather).
    class_ids = lax.broadcasted_iota(jnp.int32, (c, tn), dimension=0)
    onehot = (class_ids == tgt).astype(jnp.float32)               # (C, TILE_N)
    tgt_shifted = jnp.sum(shifted * onehot, axis=0, keepdims=True)  # (1, TILE_N)

    # ce = -log_softmax[target];  pt = exp(-ce) (exact, reuses ce; one EUP exp).
    ce = jnp.log(sum_exp) - tgt_shifted                           # (1, TILE_N)
    pt = jnp.exp(-ce)                                             # (1, TILE_N)

    one_minus_pt = jnp.maximum(1.0 - pt, 0.0)   # clamp tiny negatives from rounding
    if float(gamma) == int(gamma) and gamma >= 0:
        g = int(gamma)
        if g == 0:
            mod = jnp.ones_like(one_minus_pt)
        else:
            mod = one_minus_pt
            for _ in range(g - 1):              # gamma=2 -> one exact VPU multiply
                mod = mod * one_minus_pt
    else:
        mod = one_minus_pt ** jnp.float32(gamma)

    f_loss = mod * ce
    if float(alpha) != 1.0:
        f_loss = jnp.float32(alpha) * f_loss

    if needs_mask:
        # Mask padded / ragged batch columns (global column index >= N).
        col = pid * tile_n + lax.broadcasted_iota(jnp.int32, (1, tn), dimension=1)
        f_loss = jnp.where(col < n_total, f_loss, 0.0)

    # Per-tile partial sum accumulated into the grid-resident output block.
    out_ref[...] += jnp.sum(f_loss, keepdims=True)

    @pl.when(pid == pl.num_programs(0) - 1)
    def _finalize():
        if reduction == "mean":
            out_ref[...] = out_ref[...] * jnp.float32(1.0 / n_total)
        # reduction == "sum": accumulated value is already the answer.
        # TODO(synk): reduction='none' (per-sample vector output) needs an
        # (N,)-shaped output spec; only 'mean'/'sum' are implemented here.


def focal_loss(logits, targets, *, alpha=1.0, gamma=2.0, reduction="mean",
               tile_n=2048):
    """Pallas TPU focal loss.

    logits:  (N, C) float (any float dtype; cast to f32 once per tile in-kernel)
    targets: (N,)   int class indices in [0, C)
    returns: scalar float32 ('mean' or 'sum' reduction)
    """
    if reduction not in ("mean", "sum"):
        raise NotImplementedError("Only 'mean' and 'sum' reductions are supported.")
    n, c = logits.shape

    # Lane-dense layout: batch -> lanes (last dim), classes -> sublanes.
    logits_t = logits.T                                 # (C, N)
    tgt = targets.astype(jnp.int32).reshape(1, n)       # (1, N)

    # Tile the batch axis; pad to a lane/tile-aligned width (masked in-kernel).
    tile_n = min(tile_n, _round_up(n, 128))
    n_pad = _round_up(n, tile_n)
    if n_pad != n:
        logits_t = jnp.pad(logits_t, ((0, 0), (0, n_pad - n)))
        tgt = jnp.pad(tgt, ((0, 0), (0, n_pad - n)))
    num_tiles = n_pad // tile_n
    needs_mask = n_pad != n

    out = pl.pallas_call(
        partial(focal_loss_kernel, alpha=float(alpha), gamma=float(gamma),
                n_total=n, tile_n=tile_n, needs_mask=needs_mask,
                reduction=reduction),
        out_shape=jax.ShapeDtypeStruct((1, 1), jnp.float32),
        grid=(num_tiles,),
        in_specs=[
            pl.BlockSpec((c, tile_n), lambda i: (0, i)),   # (C, TILE_N) logits slab
            pl.BlockSpec((1, tile_n), lambda i: (0, i)),   # (1, TILE_N) targets
        ],
        # Same (0, 0) block every grid step -> VMEM-resident scalar accumulator.
        out_specs=pl.BlockSpec((1, 1), lambda i: (0, 0)),
        compiler_params=pltpu.CompilerParams(
            # The grid axis carries the running sum -> must be 'arbitrary'.
            dimension_semantics=("arbitrary",),
            # Tiles are tiny (C x TILE_N f32, ~128 KiB double-buffered); modest
            # explicit limit keeps headroom on v7x's 64 MiB VMEM.
            vmem_limit_bytes=32 * 1024 * 1024,
        ),
    )(logits_t, tgt)
    return out[0, 0]


if __name__ == "__main__":
    key = jax.random.PRNGKey(0)
    k_logits, k_targets = jax.random.split(key)

    N, C = 32, 16  # small (batch, num_classes) classifier head
    logits = jax.random.normal(k_logits, (N, C), dtype=jnp.float32)
    targets = jax.random.randint(k_targets, (N,), 0, C, dtype=jnp.int32)

    loss = focal_loss(logits, targets, alpha=1.0, gamma=2.0)
    loss = jax.block_until_ready(loss)

    # Pure-JAX reference of the same math (softmax CE + focal, mean reduction).
    logp = jax.nn.log_softmax(logits, axis=-1)
    ce_ref = -jnp.take_along_axis(logp, targets[:, None], axis=-1)[:, 0]
    pt_ref = jnp.exp(-ce_ref)
    ref = jnp.mean(1.0 * (1.0 - pt_ref) ** 2.0 * ce_ref)

    assert jnp.allclose(loss, ref, rtol=1e-4, atol=1e-5), (loss, ref)

    print("KERNEL_OK")
</pallas_src>

<mosaic_0001>
module attributes {stable_mosaic.version = 11 : i64} {
  func.func @focal_loss_kernel(%arg0: i32, %arg1: memref<16x128xf32, #tpu.memory_space<vmem>>, %arg2: memref<1x128xi32, #tpu.memory_space<vmem>>, %arg3: memref<1x1xf32, #tpu.memory_space<vmem>>) attributes {dimension_semantics = [#tpu.dimension_semantics<arbitrary>], iteration_bounds = array<i64: 1>, scalar_prefetch = 0 : i64, scratch_operands = 0 : i64, tpu.core_type = #tpu.core_type<tc>, window_params = [{transform_indices = @transform_0, window_bounds = array<i64: 16, 128>}, {transform_indices = @transform_1, window_bounds = array<i64: 1, 128>}, {pipeline_mode = #tpu.pipeline_mode<synchronous>, transform_indices = @transform_2, window_bounds = array<i64: 1, 1>}]} {
    %c0_i32 = arith.constant 0 : i32
    %0 = arith.cmpi eq, %arg0, %c0_i32 : i32
    %1 = arith.extui %0 : i1 to i32
    %c0_i32_0 = arith.constant 0 : i32
    %2 = arith.cmpi ne, %1, %c0_i32_0 : i32
    scf.if %2 {
      %cst_17 = arith.constant 0.000000e+00 : f32
      %50 = vector.broadcast %cst_17 : f32 to vector<1x1xf32>
      %c0_18 = arith.constant 0 : index
      %c0_19 = arith.constant 0 : index
      %51 = vector.load %arg3[%c0_18, %c0_19] : memref<1x1xf32, #tpu.memory_space<vmem>>, vector<1x1xf32>
      tpu.vector_store %arg3[%c0_18, %c0_19], %50 {strides = array<i32>} : memref<1x1xf32, #tpu.memory_space<vmem>>, vector<1x1xf32>,
    } else {
    }
    %c0 = arith.constant 0 : index
    %c0_1 = arith.constant 0 : index
    %3 = vector.load %arg1[%c0, %c0_1] : memref<16x128xf32, #tpu.memory_space<vmem>>, vector<16x128xf32>
    %c0_2 = arith.constant 0 : index
    %c0_3 = arith.constant 0 : index
    %4 = vector.load %arg2[%c0_2, %c0_3] : memref<1x128xi32, #tpu.memory_space<vmem>>, vector<1x128xi32>
    %cst = arith.constant dense<0xFF800000> : vector<128xf32>
    %5 = vector.multi_reduction <maximumf>, %3, %cst [0] : vector<16x128xf32> to vector<128xf32>
    %6 = vector.shape_cast %5 : vector<128xf32> to vector<1x128xf32>
    %7 = vector.broadcast %6 : vector<1x128xf32> to vector<16x128xf32>
    %8 = arith.subf %3, %7 : vector<16x128xf32>
    %9 = math.exp %8 : vector<16x128xf32>
    %cst_4 = arith.constant dense<0.000000e+00> : vector<128xf32>
    %10 = vector.multi_reduction <add>, %9, %cst_4 [0] : vector<16x128xf32> to vector<128xf32>
    %11 = vector.shape_cast %10 : vector<128xf32> to vector<1x128xf32>
    %12 = tpu.iota {dimensions = array<i32: 0>} : vector<16x128xi32>
    %13 = vector.broadcast %4 : vector<1x128xi32> to vector<16x128xi32>
    %14 = arith.cmpi eq, %12, %13 : vector<16x128xi32>
    %15 = arith.extui %14 : vector<16x128xi1> to vector<16x128xi32>
    %16 = arith.sitofp %15 : vector<16x128xi32> to vector<16x128xf32>
    %17 = arith.mulf %8, %16 : vector<16x128xf32>
    %cst_5 = arith.constant dense<0.000000e+00> : vector<128xf32>
    %18 = vector.multi_reduction <add>, %17, %cst_5 [0] : vector<16x128xf32> to vector<128xf32>
    %19 = vector.shape_cast %18 : vector<128xf32> to vector<1x128xf32>
    %20 = math.log %11 : vector<1x128xf32>
    %21 = arith.subf %20, %19 : vector<1x128xf32>
    %cst_6 = arith.constant 0.000000e+00 : f32
    %22 = vector.broadcast %cst_6 : f32 to vector<1x128xf32>
    %23 = arith.subf %22, %21 : vector<1x128xf32>
    %24 = math.exp %23 : vector<1x128xf32>
    %cst_7 = arith.constant 1.000000e+00 : f32
    %25 = vector.broadcast %cst_7 : f32 to vector<1x128xf32>
    %26 = arith.subf %25, %24 : vector<1x128xf32>
    %cst_8 = arith.constant 0.000000e+00 : f32
    %27 = vector.broadcast %cst_8 : f32 to vector<1x128xf32>
    %28 = arith.maximumf %26, %27 : vector<1x128xf32>
    %29 = arith.mulf %28, %28 : vector<1x128xf32>
    %30 = arith.mulf %29, %21 : vector<1x128xf32>
    %c128_i32 = arith.constant 128 : i32
    %31 = arith.muli %arg0, %c128_i32 : i32
    %32 = tpu.iota {dimensions = array<i32: 1>} : vector<1x128xi32>
    %33 = vector.broadcast %31 : i32 to vector<1x128xi32>
    %34 = arith.addi %33, %32 : vector<1x128xi32>
    %c32_i32 = arith.constant 32 : i32
    %35 = vector.broadcast %c32_i32 : i32 to vector<1x128xi32>
    %36 = arith.cmpi slt, %34, %35 : vector<1x128xi32>
    %cst_9 = arith.constant 0.000000e+00 : f32
    %37 = vector.broadcast %cst_9 : f32 to vector<1x128xf32>
    %38 = arith.select %36, %30, %37 : vector<1x128xi1>, vector<1x128xf32>
    %c0_10 = arith.constant 0 : index
    %c0_11 = arith.constant 0 : index
    %39 = vector.load %arg3[%c0_10, %c0_11] : memref<1x1xf32, #tpu.memory_space<vmem>>, vector<1x1xf32>
    %40 = vector.shape_cast %38 : vector<1x128xf32> to vector<1x1x128xf32>
    %cst_12 = arith.constant dense<0.000000e+00> : vector<1xf32>
    %41 = vector.multi_reduction <add>, %40, %cst_12 [1, 2] : vector<1x1x128xf32> to vector<1xf32>
    %42 = vector.shape_cast %41 : vector<1xf32> to vector<1x1x1xf32>
    %43 = vector.extract %42[0, 0, 0] : f32 from vector<1x1x1xf32>
    %44 = vector.broadcast %43 : f32 to vector<1x1xf32>
    %45 = arith.addf %39, %44 : vector<1x1xf32>
    %c0_13 = arith.constant 0 : index
    %c0_14 = arith.constant 0 : index
    %46 = vector.load %arg3[%c0_13, %c0_14] : memref<1x1xf32, #tpu.memory_space<vmem>>, vector<1x1xf32>
    tpu.vector_store %arg3[%c0_13, %c0_14], %45 {strides = array<i32>} : memref<1x1xf32, #tpu.memory_space<vmem>>, vector<1x1xf32>,
    %c0_i32_15 = arith.constant 0 : i32
    %47 = arith.cmpi eq, %arg0, %c0_i32_15 : i32
    %48 = arith.extui %47 : i1 to i32
    %c0_i32_16 = arith.constant 0 : i32
    %49 = arith.cmpi ne, %48, %c0_i32_16 : i32
    scf.if %49 {
      %c0_17 = arith.constant 0 : index
      %c0_18 = arith.constant 0 : index
      %50 = vector.load %arg3[%c0_17, %c0_18] : memref<1x1xf32, #tpu.memory_space<vmem>>, vector<1x1xf32>
      %cst_19 = arith.constant 3.125000e-02 : f32
      %51 = vector.broadcast %cst_19 : f32 to vector<1x1xf32>
      %52 = arith.mulf %50, %51 : vector<1x1xf32>
      %c0_20 = arith.constant 0 : index
      %c0_21 = arith.constant 0 : index
      %53 = vector.load %arg3[%c0_20, %c0_21] : memref<1x1xf32, #tpu.memory_space<vmem>>, vector<1x1xf32>
      tpu.vector_store %arg3[%c0_20, %c0_21], %52 {strides = array<i32>} : memref<1x1xf32, #tpu.memory_space<vmem>>, vector<1x1xf32>,
    } else {
    }
    return
  }
  func.func @transform_0(%arg0: i32) -> (i32, i32) {
    %c0_i32 = arith.constant 0 : i32
    %c0_i32_0 = arith.constant 0 : i32
    return %c0_i32, %arg0 : i32, i32
  }
  func.func @transform_1(%arg0: i32) -> (i32, i32) {
    %c0_i32 = arith.constant 0 : i32
    %c0_i32_0 = arith.constant 0 : i32
    return %c0_i32, %arg0 : i32, i32
  }
  func.func @transform_2(%arg0: i32) -> (i32, i32) {
    %c0_i32 = arith.constant 0 : i32
    %c0_i32_0 = arith.constant 0 : i32
    %c0_i32_1 = arith.constant 0 : i32
    return %c0_i32, %c0_i32_0 : i32, i32
  }
}

</mosaic_0001>

<bundles_post_ra>
// kernel: tpu_custom_call.1
= control target key start
LH: loop header
LB: loop body
LE: loop exit
PB: predicated region body
PF: predicated region fallthrough
CT: control target
= control target key end

     0   :  { %7 = vsyncpa [#allocation3], 0  ;;  %s225_s0 = inlined_call_operand.hbm [shape: f32[16,128], index: 0, kind: input, shape index: {}]   ;;  %s226_s1 = inlined_call_operand.vmem [shape: s32[1,128], index: 1, kind: input, shape index: {}]   ;;  %s227_s2 = inlined_call_operand.hbm [shape: f32[1,1], index: 2, kind: output, shape index: {}]  }
   0x1   :  { %8 = vsyncpa [#allocation4], 0  ;;  %s193_s9 = smov [#allocation2]  }
   0x2   :  { %s14_s10 = sshll.u32 %s193_s9, 4  ;;  %s15_s10 = int_to_ptr.vmem [resolvable:$true] %s14_s10 }
   0x3   :  { %s157_s11 = scalar_lea.vmem %s15_s10, 256  ;;  %p162_p1 = scmp.lt.s32.totalorder %s15_s10, %s15_s10 }
   0x4   :  { %p158_p0 = scmp.ne.s32.totalorder %s15_s10, %s157_s11  ;;  %p163_p2 = scmp.lt.s32.totalorder %s157_s11, %s157_s11 }
   0x6   :  { %p164_p3 = por %p163_p2, %p162_p1 }
   0x8   :  { %p165_p4 = pnand %p164_p3, %p158_p0 }
   0xa   :  { %168 = shalt.err (!%p165_p4)
}
   0xb   :  { %s194_s12 = smov 128   ;;  %s195_s13 = smov 8  }
   0xc   :  { %20 = dma.hbm_to_vmem [thread:$0]  %s225_s0, 256, %s15_s10, [#allocation3], %s194_s12, %s194_s12, %s195_s13  }
   0xd   :  { %189 = dma.done.wait [#allocation3], 256  }
   0xe   :  { %190 = vsyncadd [#allocation3], 4294967040  ;;  %v32_v0 = vld [vmem:[#allocation2] sm:$0xff]  ;;  %v33_v1 = vld [vmem:[#allocation2 + $0x8] sm:$0xff]  ;;  %v55_v9 = vlaneseq  ;;  %v196_v17 = vmov 0.0   ;;  %vm95_vm3 = vcmask 1040384  }
   0xf   :  { %v35_v2 = vmax.f32 %v32_v0, %v33_v1  ;;  %v131_v16 = vld [vmem:[%s226_s1] ss:$0 sm:$0xff]  ;;  %vm30_vm4 = vcmask 0   ;;  %s197_s17 = smov [#allocation5]  }
  0x10   :  { %v56_v14 = vshrl.u32 %v55_v9, 7  ;;  %v89_v45 = vand.u32 127, %v55_v9  ;;  %31 = vst.msk [vmem:[#allocation5] sm:$0x1] %vm30_vm4, %v196_v17  ;;  %s122_s18 = sshll.u32 %s197_s17, 4  ;;  %s123_s18 = int_to_ptr.vmem [resolvable:$true] %s122_s18 }
  0x11   :  { %v36_v3 = vrot.slane %v35_v2, 4  ;;  %s169_s19 = scalar_lea.vmem %s123_s18, 16  ;;  %s173_s20 = scalar_lea.vmem %s123_s18, 32 }
  0x12   :  { %v57_v15 = vadd.s32 8, %v56_v14  ;;  %vm62_vm0 = vcmp.eq.s32.totalorder %v56_v14, %v131_v16  ;;  %vm92_vm2 = vcmp.lt.s32.totalorder %v89_v45, 32  ;;  %p170_p5 = scmp.ne.s32.totalorder %s123_s18, %s169_s19  ;;  %p174_p6 = scmp.lt.s32.totalorder %s123_s18, %s123_s18 }
  0x13   :  { %v37_v4 = vmax.f32 %v35_v2, %v36_v3  ;;  %v132_v18 = vsel %vm62_vm0, 1.0, %v196_v17  ;;  %p175_p7 = scmp.lt.s32.totalorder %s173_s20, %s169_s19 }
  0x14   :  { %vm63_vm1 = vcmp.eq.s32.totalorder %v57_v15, %v131_v16 }
  0x15   :  { %v38_v5 = vrot.slane %v37_v4, 2  ;;  %v133_v19 = vsel %vm63_vm1, 1.0, %v196_v17  ;;  %p176_p8 = por %p175_p7, %p174_p6 }
  0x17   :  { %v39_v6 = vmax.f32 %v37_v4, %v38_v5  ;;  %v94_v58 = vld [vmem:[#allocation5] sm:$0x1]  ;;  %p177_p9 = pnand %p176_p8, %p170_p5 }
  0x19   :  { %v40_v7 = vrot.slane %v39_v6, 1 }
  0x1b   :  { %v41_v8 = vmax.f32 %v39_v6, %v40_v7 }
  0x1d   :  { %v42_v10 = vsub.f32 %v32_v0, %v41_v8  ;;  %v43_v11 = vsub.f32 %v33_v1, %v41_v8 }
  0x1f   :  { %v44_v12 = vmul.f32 1.442695, %v42_v10  ;;  %v46_v13 = vmul.f32 1.442695, %v43_v11  ;;  %v68_v21 = vmul.f32 %v132_v18, %v42_v10  ;;  %v69_v22 = vmul.f32 %v133_v19, %v43_v11 }
  0x21   :  { %141 = vpow2.f32 %v44_v12  ;;  %v70_v26 = vadd.f32 %v69_v22, %v68_v21 }
  0x22   :  { %143 = vpow2.f32 %v46_v13 }
  0x23   :  { %v71_v29 = vrot.slane %v70_v26, 4 }
  0x25   :  { %v72_v32 = vadd.f32 %v71_v29, %v70_v26 }
  0x27   :  { %v73_v34 = vrot.slane %v72_v32, 2 }
  0x29   :  { %v74_v35 = vadd.f32 %v73_v34, %v72_v32 }
  0x2b   :  { %v75_v36 = vrot.slane %v74_v35, 1 }
  0x2d   :  { %v76_v37 = vadd.f32 %v75_v36, %v74_v35 }
  0x2e   :  { %v142_v20 = vpop.eup %141 }
  0x2f   :  { %v144_v23 = vpop.eup %143 }
  0x30   :  { %v48_v24 = vadd.f32 %v144_v23, %v142_v20 }
  0x32   :  { %v49_v25 = vrot.slane %v48_v24, 4 }
  0x34   :  { %v50_v27 = vadd.f32 %v49_v25, %v48_v24 }
  0x36   :  { %v51_v28 = vrot.slane %v50_v27, 2 }
  0x38   :  { %v52_v30 = vadd.f32 %v51_v28, %v50_v27 }
  0x3a   :  { %v53_v31 = vrot.slane %v52_v30, 1 }
  0x3c   :  { %v54_v33 = vadd.f32 %v53_v31, %v52_v30 }
  0x3e   :  { %145 = vlog2.f32 %v54_v33 }
  0x4b   :  { %v146_v38 = vpop.eup %145 }
  0x4c   :  { %v78_v39 = vmul.f32 0.6931472, %v146_v38 }
  0x4e   :  { %v79_v40 = vsub.f32 %v78_v39, %v76_v37 }
  0x50   :  { %v80_v41 = vsub.f32 0.0, %v79_v40 }
  0x52   :  { %v81_v42 = vmul.f32 1.442695, %v80_v41 }
  0x54   :  { %147 = vpow2.f32 %v81_v42 }
  0x61   :  { %v148_v43 = vpop.eup %147 }
  0x62   :  { %v83_v44 = vsub.f32 1.0, %v148_v43 }
  0x64   :  { %v84_v46 = vmax.f32 %v83_v44, 0.0 }
  0x66   :  { %v85_v47 = vmul.f32 %v84_v46, %v84_v46 }
  0x68   :  { %v86_v48 = vmul.f32 %v85_v47, %v79_v40 }
  0x6a   :  { %v93_v49 = vsel %vm92_vm2, %v86_v48, 0.0 }
  0x6b   :  { %v96_v50 = vsel %vm95_vm3, %v93_v49, 0.0 }
  0x6c   :  { %97 = vadd.xlane.f32.xlu0 %v96_v50 }
  0xf5   :  { %v98_v51 = vpop.xlane.xlu0 %97 }
  0xf6   :  { %v99_v52 = vrot.slane %v98_v51, 4 }
  0xf8   :  { %v100_v53 = vadd.f32 %v99_v52, %v98_v51 }
  0xfa   :  { %v101_v54 = vrot.slane %v100_v53, 2 }
  0xfc   :  { %v102_v55 = vadd.f32 %v101_v54, %v100_v53 }
  0xfe   :  { %v103_v56 = vrot.slane %v102_v55, 1 }
 0x100   :  { %v104_v57 = vadd.f32 %v103_v56, %v102_v55 }
 0x102   :  { %134 = vpush %v104_v57 }
 0x133   :  { %s135_s1 = spop %134 }
 0x134   :  { %v106_v59 = vstv %s135_s1 }
 0x135   :  { %v107_v60 = vadd.f32 %v106_v59, %v94_v58 }
 0x137   :  { %109 = vst.msk [vmem:[#allocation5] sm:$0x1] %vm30_vm4, %v107_v60 }
 0x13e   :  { %v113_v61 = vld [vmem:[#allocation5] sm:$0x1] }
 0x13f   :  { %v114_v62 = vmul.f32 0.03125, %v113_v61 }
 0x141   :  { %115 = vst.msk [vmem:[#allocation5] sm:$0x1] %vm30_vm4, %v114_v62 }
 0x142   :  { %180 = shalt.err (!%p177_p9)
}
 0x143   :  { %125 = dma.vmem_to_hbm [thread:$0]  %s123_s18, 16, %s227_s2, [#allocation4]  }
 0x144   :  { %191 = dma.done.wait [#allocation4], 16  }
 0x145   :  { %192 = vsyncadd [#allocation4], 4294967280 }
 0x146   :  { %129 = vsyncpa [#allocation3], 1 }
 0x147   :  { %130 = vsyncpa [#allocation4], 1 }

</bundles_post_ra>
